<compile_context>
chip_gen: v7x
topology: tpu7x:2x2x1
jax: 0.10.0
libtpu: 0.0.40
codegen_flags: <defaults>
</compile_context>

<pallas_src>
import functools

import jax
import jax.numpy as jnp
from jax.experimental import pallas as pl
from jax.experimental.pallas import tpu as pltpu

# ---------------- configuration (small, consistent with the module) ----------
B = 2            # batch
MAX_LEN = 8      # sequence length fed to the backbone
VOCAB = 100      # mini-BERT vocab
D_BERT = 32      # backbone hidden size (self.bert.config.hidden_size)
HIDDEN = 32      # `hidden_size` arg of BERT_LCM
NUM_CLASSES = 8  # `num_classes` (must be a multiple of 8 for the packed layout)
WVDIM = 16       # `wvdim` (label embedding dim)
FF = 64          # mini-BERT FFN size
N_HEADS = 2

LANE = 128                         # lane width; all kernel operands padded to it
ROW_W1 = 0                         # fc1   augmented weight block rows [0, 128)
ROW_WL = LANE                      # label_fc augmented weight block  [128, 256)
ROW_W2 = 2 * LANE                  # fc2 weight block                 [256, 384)
ROW_WS = 3 * LANE                  # sim_fc weight block              [384, 392)
ROW_BIAS = 3 * LANE + NUM_CLASSES  # bias rows (b2, bsim)             [392, 400)
SLAB_ROWS = ROW_BIAS + 8           # 400


# =============================== Pallas kernel ================================
def lcm_head_kernel(x_ref, le_ref, p_ref, out_ref):
    """Fused LCM head on lane-dense operands.

    x_ref  : (B, 128)      [CLS | 1 | 0...]          VMEM
    le_ref : (B*C, 128)    [label_emb | 1 | 0...]    VMEM
    p_ref  : (400, 128)    packed parameter slab     VMEM
    out_ref: (2, B, 128)   row 0 = y_pred (cols 0:C), row 1 = label_sim_dict
    """
    # Static, 8-aligned row slices of the parameter slab (views, no copies).
    w1a = p_ref[ROW_W1:ROW_W1 + LANE, :]            # fc1 weight + folded bias row
    wla = p_ref[ROW_WL:ROW_WL + LANE, :]            # label_fc weight + folded bias
    w2b = p_ref[ROW_W2:ROW_W2 + LANE, :]            # fc2 weight (zero-padded)
    wsb = p_ref[ROW_WS:ROW_WS + NUM_CLASSES, :]     # sim_fc weight (zero-padded)
    bias = p_ref[ROW_BIAS:ROW_BIAS + 8, :]          # row 0 = b2, row 1 = bsim

    x = x_ref[...]                                                   # (B, 128)

    # text_emb = tanh(bert_fc1(cls))   (bias folded via ones column / bias row)
    t_full = jnp.tanh(jnp.dot(x, w1a, preferred_element_type=jnp.float32))
    # cols HIDDEN:128 of t_full are exactly 0 (zero weight cols -> tanh(0)).

    # y_pred = bert_fc2(text_emb)
    y_full = jnp.dot(t_full, w2b, preferred_element_type=jnp.float32) + bias[0:1, :]

    # label_emb = tanh(label_fc(label_emb))   (bias folded)
    le = le_ref[...]                                                 # (B*C, 128)
    lh = jnp.tanh(jnp.dot(le, wla, preferred_element_type=jnp.float32))

    # doc_product = bmm(label_emb, text_emb.unsqueeze(-1)).squeeze(-1)
    b = x.shape[0]
    c = le.shape[0] // b
    lh3 = lh.reshape(b, c, lh.shape[-1])             # (B, C=8, 128): tile-aligned split
    doc = jnp.sum(lh3 * t_full[:, None, :], axis=-1)                 # (B, C)

    # label_sim_dict = sim_fc(doc_product)
    sim_full = jnp.dot(doc, wsb, preferred_element_type=jnp.float32) + bias[1:2, :]

    out_ref[0, :, :] = y_full.astype(out_ref.dtype)
    out_ref[1, :, :] = sim_full.astype(out_ref.dtype)


def _pack_head_params(p):
    """Pack all head Linear weights/biases into one (400, 128) f32 slab."""
    slab = jnp.zeros((SLAB_ROWS, LANE), jnp.float32)
    # bert_fc1: weight rows 0:32, folded bias at row 32 (matches ones col of x_aug).
    slab = slab.at[ROW_W1:ROW_W1 + D_BERT, 0:HIDDEN].set(p["w1"])
    slab = slab.at[ROW_W1 + D_BERT, 0:HIDDEN].set(p["b1"])
    # label_fc: weight rows 0:16, folded bias at row 16.
    slab = slab.at[ROW_WL:ROW_WL + WVDIM, 0:HIDDEN].set(p["wl"])
    slab = slab.at[ROW_WL + WVDIM, 0:HIDDEN].set(p["bl"])
    # bert_fc2 weight (zero-padded to (128, 128) block).
    slab = slab.at[ROW_W2:ROW_W2 + HIDDEN, 0:NUM_CLASSES].set(p["w2"])
    # sim_fc weight.
    slab = slab.at[ROW_WS:ROW_WS + NUM_CLASSES, 0:NUM_CLASSES].set(p["wsim"])
    # remaining biases as single rows.
    slab = slab.at[ROW_BIAS, 0:NUM_CLASSES].set(p["b2"])
    slab = slab.at[ROW_BIAS + 1, 0:NUM_CLASSES].set(p["bsim"])
    return slab


def lcm_head(text_cls, label_emb_gathered, head_params):
    """Wrapper: single-program pallas_call; 3 input DMAs, 1 output DMA."""
    bsz = text_cls.shape[0]
    n_cls = label_emb_gathered.shape[1]

    # Lane-dense augmented inputs (bias folding: ones column after the features).
    x_aug = jnp.concatenate(
        [text_cls.astype(jnp.float32),
         jnp.ones((bsz, 1), jnp.float32),
         jnp.zeros((bsz, LANE - D_BERT - 1), jnp.float32)], axis=1)      # (B, 128)
    le2 = label_emb_gathered.reshape(bsz * n_cls, WVDIM).astype(jnp.float32)
    le_aug = jnp.concatenate(
        [le2,
         jnp.ones((bsz * n_cls, 1), jnp.float32),
         jnp.zeros((bsz * n_cls, LANE - WVDIM - 1), jnp.float32)], axis=1)  # (B*C, 128)

    slab = _pack_head_params(head_params)                                 # (400, 128)

    flops = (2 * bsz * LANE * LANE            # fc1
             + 2 * bsz * LANE * LANE          # fc2
             + 2 * bsz * n_cls * LANE * LANE  # label_fc
             + 2 * bsz * n_cls * LANE         # doc product
             + 2 * bsz * n_cls * LANE)        # sim_fc
    transcendentals = (bsz + bsz * n_cls) * LANE
    bytes_accessed = 4 * (bsz * LANE + bsz * n_cls * LANE
                          + SLAB_ROWS * LANE + 2 * bsz * LANE)

    vmem_spec = pl.BlockSpec(memory_space=pltpu.MemorySpace.VMEM)
    out = pl.pallas_call(
        lcm_head_kernel,
        out_shape=jax.ShapeDtypeStruct((2, bsz, LANE), jnp.float32),
        in_specs=[vmem_spec, vmem_spec, vmem_spec],
        out_specs=vmem_spec,
        cost_estimate=pl.CostEstimate(flops=flops,
                                      transcendentals=transcendentals,
                                      bytes_accessed=bytes_accessed),
    )(x_aug, le_aug, slab)

    y_pred = out[0, :, :n_cls]
    label_sim_dict = out[1, :, :n_cls]
    return y_pred, label_sim_dict


# ====================== deterministic mini-BERT (plain JAX glue) ==============
def _layernorm(x, g, b, eps=1e-12):
    m = jnp.mean(x, axis=-1, keepdims=True)
    var = jnp.mean((x - m) ** 2, axis=-1, keepdims=True)
    return (x - m) / jnp.sqrt(var + eps) * g + b


def mini_bert(params, input_ids, token_type_ids):
    """Tiny 1-layer post-LN encoder standing in for BertModel; returns last_hidden_state."""
    p = params
    seq = input_ids.shape[1]
    x = (p["word_emb"][input_ids]
         + p["type_emb"][token_type_ids]
         + p["pos_emb"][None, :seq, :])
    x = _layernorm(x, p["ln0_g"], p["ln0_b"])

    bsz, s, d = x.shape
    dh = d // N_HEADS
    q = x @ p["wq"] + p["bq"]
    k = x @ p["wk"] + p["bk"]
    v = x @ p["wv"] + p["bv"]

    def split(t):
        return t.reshape(bsz, s, N_HEADS, dh).transpose(0, 2, 1, 3)

    q, k, v = split(q), split(k), split(v)
    att = jax.nn.softmax(q @ k.transpose(0, 1, 3, 2) / jnp.sqrt(float(dh)), axis=-1)
    ctx = (att @ v).transpose(0, 2, 1, 3).reshape(bsz, s, d)
    x = _layernorm(x + ctx @ p["wo"] + p["bo"], p["ln1_g"], p["ln1_b"])

    ff = jax.nn.gelu(x @ p["wf1"] + p["bf1"]) @ p["wf2"] + p["bf2"]
    x = _layernorm(x + ff, p["ln2_g"], p["ln2_b"])
    return x  # (B, S, D_BERT)


# ============================ parameter initialization ========================
def init_params(key):
    keys = jax.random.split(key, 32)
    n = lambda i, shape: (0.02 * jax.random.normal(keys[i], shape)).astype(jnp.float32)

    bert = {
        "word_emb": n(0, (VOCAB, D_BERT)),
        "type_emb": n(1, (2, D_BERT)),
        "pos_emb":  n(2, (MAX_LEN, D_BERT)),
        "ln0_g": jnp.ones((D_BERT,), jnp.float32), "ln0_b": jnp.zeros((D_BERT,), jnp.float32),
        "wq": n(3, (D_BERT, D_BERT)), "bq": jnp.zeros((D_BERT,), jnp.float32),
        "wk": n(4, (D_BERT, D_BERT)), "bk": jnp.zeros((D_BERT,), jnp.float32),
        "wv": n(5, (D_BERT, D_BERT)), "bv": jnp.zeros((D_BERT,), jnp.float32),
        "wo": n(6, (D_BERT, D_BERT)), "bo": jnp.zeros((D_BERT,), jnp.float32),
        "ln1_g": jnp.ones((D_BERT,), jnp.float32), "ln1_b": jnp.zeros((D_BERT,), jnp.float32),
        "wf1": n(7, (D_BERT, FF)), "bf1": jnp.zeros((FF,), jnp.float32),
        "wf2": n(8, (FF, D_BERT)), "bf2": jnp.zeros((D_BERT,), jnp.float32),
        "ln2_g": jnp.ones((D_BERT,), jnp.float32), "ln2_b": jnp.zeros((D_BERT,), jnp.float32),
    }
    head = {
        # nn.Linear weights stored pre-transposed as (in, out); biases as 1-D (out,).
        "w1": n(9,  (D_BERT, HIDDEN)),        "b1": n(10, (HIDDEN,)),       # bert_fc1
        "w2": n(11, (HIDDEN, NUM_CLASSES)),   "b2": n(12, (NUM_CLASSES,)),  # bert_fc2
        "wl": n(13, (WVDIM, HIDDEN)),         "bl": n(14, (HIDDEN,)),       # label_fc
        "wsim": n(15, (NUM_CLASSES, NUM_CLASSES)), "bsim": n(16, (NUM_CLASSES,)),  # sim_fc
        "label_emb_table": n(17, (NUM_CLASSES, WVDIM)),                     # nn.Embedding
    }
    return bert, head


# ================================= full forward ===============================
@functools.partial(jax.jit, static_argnums=())
def bert_lcm_forward(bert_params, head_params, input_ids, token_type_ids, labels):
    # backbone (glue) -> last_hidden_state, take [CLS]
    last_hidden_state = mini_bert(bert_params, input_ids, token_type_ids)
    text_cls = last_hidden_state[:, 0, :]                              # (B, D_BERT)
    # embedding lookup (glue): label_emb = self.label_emb(labels)
    label_emb_g = jnp.take(head_params["label_emb_table"], labels, axis=0)  # (B, C, WVDIM)
    # fused LCM head (Pallas kernel)
    y_pred, label_sim_dict = lcm_head(text_cls, label_emb_g, head_params)
    return y_pred, label_sim_dict


if __name__ == "__main__":
    key = jax.random.PRNGKey(0)
    k_param, k_ids = jax.random.split(key)
    bert_params, head_params = init_params(k_param)

    input_ids = jax.random.randint(k_ids, (B, MAX_LEN), 0, VOCAB, dtype=jnp.int32)
    token_type_ids = jnp.zeros((B, MAX_LEN), dtype=jnp.int32)
    # standard LCM usage: labels = arange(num_classes) per example
    labels = jnp.tile(jnp.arange(NUM_CLASSES, dtype=jnp.int32)[None, :], (B, 1))

    y_pred, label_sim_dict = bert_lcm_forward(
        bert_params, head_params, input_ids, token_type_ids, labels)
    jax.block_until_ready((y_pred, label_sim_dict))

    assert y_pred.shape == (B, NUM_CLASSES)
    assert label_sim_dict.shape == (B, NUM_CLASSES)
    print("KERNEL_OK")
</pallas_src>

<mosaic_0001>
module attributes {stable_mosaic.version = 11 : i64} {
  func.func @lcm_head_kernel(%arg0: memref<2x128xf32, #tpu.memory_space<vmem>>, %arg1: memref<16x128xf32, #tpu.memory_space<vmem>>, %arg2: memref<400x128xf32, #tpu.memory_space<vmem>>, %arg3: memref<2x2x128xf32, #tpu.memory_space<vmem>>) attributes {dimension_semantics = [], scalar_prefetch = 0 : i64, scratch_operands = 0 : i64, tpu.core_type = #tpu.core_type<tc>} {
    %c0 = arith.constant 0 : index
    %c0_0 = arith.constant 0 : index
    %0 = vector.load %arg2[%c0, %c0_0] : memref<400x128xf32, #tpu.memory_space<vmem>>, vector<128x128xf32>
    %c128 = arith.constant 128 : index
    %c0_1 = arith.constant 0 : index
    %1 = vector.load %arg2[%c128, %c0_1] : memref<400x128xf32, #tpu.memory_space<vmem>>, vector<128x128xf32>
    %c256 = arith.constant 256 : index
    %c0_2 = arith.constant 0 : index
    %2 = vector.load %arg2[%c256, %c0_2] : memref<400x128xf32, #tpu.memory_space<vmem>>, vector<128x128xf32>
    %c384 = arith.constant 384 : index
    %c0_3 = arith.constant 0 : index
    %3 = vector.load %arg2[%c384, %c0_3] : memref<400x128xf32, #tpu.memory_space<vmem>>, vector<8x128xf32>
    %c392 = arith.constant 392 : index
    %c0_4 = arith.constant 0 : index
    %4 = vector.load %arg2[%c392, %c0_4] : memref<400x128xf32, #tpu.memory_space<vmem>>, vector<8x128xf32>
    %c0_5 = arith.constant 0 : index
    %c0_6 = arith.constant 0 : index
    %5 = vector.load %arg0[%c0_5, %c0_6] : memref<2x128xf32, #tpu.memory_space<vmem>>, vector<2x128xf32>
    %cst = arith.constant dense<0.000000e+00> : vector<2x128xf32>
    %6 = tpu.matmul %5, %0, %cst {dimension_numbers = #tpu.dot_dimension_numbers<[1], [0], [0], [1], [0, 0, 1, 1], [], []>} : vector<2x128xf32>, vector<128x128xf32>, vector<2x128xf32> -> vector<2x128xf32>
    %7 = math.tanh %6 : vector<2x128xf32>
    %cst_7 = arith.constant dense<0.000000e+00> : vector<2x128xf32>
    %8 = tpu.matmul %7, %2, %cst_7 {dimension_numbers = #tpu.dot_dimension_numbers<[1], [0], [0], [1], [0, 0, 1, 1], [], []>} : vector<2x128xf32>, vector<128x128xf32>, vector<2x128xf32> -> vector<2x128xf32>
    %9 = vector.extract_strided_slice %4 {offsets = [0, 0], sizes = [1, 128], strides = [1, 1]} : vector<8x128xf32> to vector<1x128xf32>
    %10 = vector.broadcast %9 : vector<1x128xf32> to vector<2x128xf32>
    %11 = arith.addf %8, %10 : vector<2x128xf32>
    %c0_8 = arith.constant 0 : index
    %c0_9 = arith.constant 0 : index
    %12 = vector.load %arg1[%c0_8, %c0_9] : memref<16x128xf32, #tpu.memory_space<vmem>>, vector<16x128xf32>
    %cst_10 = arith.constant dense<0.000000e+00> : vector<16x128xf32>
    %13 = tpu.matmul %12, %1, %cst_10 {dimension_numbers = #tpu.dot_dimension_numbers<[1], [0], [0], [1], [0, 0, 1, 1], [], []>} : vector<16x128xf32>, vector<128x128xf32>, vector<16x128xf32> -> vector<16x128xf32>
    %14 = math.tanh %13 : vector<16x128xf32>
    %15 = vector.shape_cast %14 : vector<16x128xf32> to vector<2x8x128xf32>
    %16 = vector.shape_cast %7 : vector<2x128xf32> to vector<2x1x128xf32>
    %17 = vector.broadcast %16 : vector<2x1x128xf32> to vector<2x8x128xf32>
    %18 = arith.mulf %15, %17 : vector<2x8x128xf32>
    %cst_11 = arith.constant dense<0.000000e+00> : vector<2x8xf32>
    %19 = vector.multi_reduction <add>, %18, %cst_11 [2] : vector<2x8x128xf32> to vector<2x8xf32>
    %cst_12 = arith.constant dense<0.000000e+00> : vector<2x128xf32>
    %20 = tpu.matmul %19, %3, %cst_12 {dimension_numbers = #tpu.dot_dimension_numbers<[1], [0], [0], [1], [0, 0, 1, 1], [], []>} : vector<2x8xf32>, vector<8x128xf32>, vector<2x128xf32> -> vector<2x128xf32>
    %21 = vector.extract_strided_slice %4 {offsets = [1, 0], sizes = [1, 128], strides = [1, 1]} : vector<8x128xf32> to vector<1x128xf32>
    %22 = vector.broadcast %21 : vector<1x128xf32> to vector<2x128xf32>
    %23 = arith.addf %20, %22 : vector<2x128xf32>
    %c0_13 = arith.constant 0 : index
    %c0_14 = arith.constant 0 : index
    %c0_15 = arith.constant 0 : index
    %24 = vector.load %arg3[%c0_13, %c0_14, %c0_15] : memref<2x2x128xf32, #tpu.memory_space<vmem>>, vector<1x2x128xf32>
    %25 = vector.shape_cast %24 : vector<1x2x128xf32> to vector<2x128xf32>
    %26 = vector.shape_cast %11 : vector<2x128xf32> to vector<1x2x128xf32>
    tpu.vector_store %arg3[%c0_13, %c0_14, %c0_15], %26 {strides = array<i32>} : memref<2x2x128xf32, #tpu.memory_space<vmem>>, vector<1x2x128xf32>,
    %c1 = arith.constant 1 : index
    %c0_16 = arith.constant 0 : index
    %c0_17 = arith.constant 0 : index
    %27 = vector.load %arg3[%c1, %c0_16, %c0_17] : memref<2x2x128xf32, #tpu.memory_space<vmem>>, vector<1x2x128xf32>
    %28 = vector.shape_cast %27 : vector<1x2x128xf32> to vector<2x128xf32>
    %29 = vector.shape_cast %23 : vector<2x128xf32> to vector<1x2x128xf32>
    tpu.vector_store %arg3[%c1, %c0_16, %c0_17], %29 {strides = array<i32>} : memref<2x2x128xf32, #tpu.memory_space<vmem>>, vector<1x2x128xf32>,
    return
  }
}

</mosaic_0001>

<bundles_post_ra>
// kernel: bert_lcm_forward.1
= control target key start
LH: loop header
LB: loop body
LE: loop exit
PB: predicated region body
PF: predicated region fallthrough
CT: control target
= control target key end

     0   :  { %v682_v0 = vmov 0.0|0.0   ;;  %vm683_vm0 = vmmov 0   ;;  %v684_v4 = vmov 0.0   ;;  %vm344_vm1 = vcmask 1041409   ;;  %s894_s2 = inlined_call_operand.vmem [shape: f32[400,128], index: 2, kind: input, shape index: {}]   ;;  %s895_s0 = inlined_call_operand.vmem [shape: f32[2,128], index: 0, kind: input, shape index: {}]   ;;  %s896_s1 = inlined_call_operand.vmem [shape: f32[16,128], index: 1, kind: input, shape index: {}]   ;;  %s897_s3 = inlined_call_operand.vmem [shape: f32[2,2,128], index: 3, kind: output, shape index: {}]  }
   0x1   :  { %592 = vmatprep.subr.bf16.mxu0 %v682_v0  ;;  %v14_v1 = vld [vmem:[%s894_s2] sm:$0xff]  ;;  %v15_v2 = vld [vmem:[%s894_s2 + $0x8] sm:$0xff]  ;;  %v16_v3 = vld [vmem:[%s894_s2 + $0x10] sm:$0xff]  ;;  %514 = vmatprep.mubr.msk.f32.mxu0 %vm683_vm0, %v684_v4  ;;  %vm346_vm2 = vcmask 64512  }
   0x2   :  { %v593_v5 = vpack.c.bf16 %v15_v2, %v14_v1  ;;  %v17_v6 = vld [vmem:[%s894_s2 + $0x18] sm:$0xff]  ;;  %616 = vmatprep.subr.bf16.mxu1 %v682_v0  ;;  %549 = vmatprep.mubr.msk.f32.mxu1 %vm683_vm0, %v684_v4  ;;  %v18_v8 = vld [vmem:[%s894_s2 + $0x20] sm:$0xff]  ;;  %v19_v9 = vld [vmem:[%s894_s2 + $0x28] sm:$0xff] }
   0x3   :  { %v596_v7 = vpack.c.bf16 %v17_v6, %v16_v3  ;;  %v599_v10 = vpack.c.bf16 %v19_v9, %v18_v8  ;;  %v20_v11 = vld [vmem:[%s894_s2 + $0x30] sm:$0xff]  ;;  %v21_v12 = vld [vmem:[%s894_s2 + $0x38] sm:$0xff]  ;;  %v22_v14 = vld [vmem:[%s894_s2 + $0x40] sm:$0xff] }
   0x4   :  { %594 = vmatpush3.bf16.msra.mxu0 %v593_v5  ;;  %v602_v13 = vpack.c.bf16 %v21_v12, %v20_v11  ;;  %v23_v15 = vld [vmem:[%s894_s2 + $0x48] sm:$0xff]  ;;  %v46_v16 = vld [vmem:[%s894_s2 + $0x100] sm:$0xff]  ;;  %v48_v18 = vld [vmem:[%s894_s2 + $0x110] sm:$0xff] }
   0x5   :  { %595 = vmatprep.subr.bf16.mxu0 %v682_v0  ;;  %v47_v17 = vld [vmem:[%s894_s2 + $0x108] sm:$0xff]  ;;  %v49_v19 = vld [vmem:[%s894_s2 + $0x118] sm:$0xff]  ;;  %v605_v21 = vpack.c.bf16 %v23_v15, %v22_v14  ;;  %v24_v22 = vld [vmem:[%s894_s2 + $0x50] sm:$0xff] }
   0x6   :  { %v617_v20 = vpack.c.bf16 %v47_v17, %v46_v16  ;;  %v620_v23 = vpack.c.bf16 %v49_v19, %v48_v18  ;;  %v25_v24 = vld [vmem:[%s894_s2 + $0x58] sm:$0xff]  ;;  %v50_v25 = vld [vmem:[%s894_s2 + $0x120] sm:$0xff]  ;;  %v51_v26 = vld [vmem:[%s894_s2 + $0x128] sm:$0xff]  ;;  %v136_v18 = vlaneseq  ;;  %v685_v19 = vmov 1966171168  }
   0x7   :  { %v608_v27 = vpack.c.bf16 %v25_v24, %v24_v22  ;;  %v26_v28 = vld [vmem:[%s894_s2 + $0x60] sm:$0xff]  ;;  %v623_v29 = vpack.c.bf16 %v51_v26, %v50_v25  ;;  %v27_v30 = vld [vmem:[%s894_s2 + $0x68] sm:$0xff]  ;;  %v52_v31 = vld [vmem:[%s894_s2 + $0x130] sm:$0xff] }
   0x8   :  { %597 = vmatpush3.bf16.msra.mxu0 %v596_v7  ;;  %618 = vmatpush3.bf16.msra.mxu1 %v617_v20  ;;  %v53_v32 = vld [vmem:[%s894_s2 + $0x138] sm:$0xff]  ;;  %v611_v33 = vpack.c.bf16 %v27_v30, %v26_v28  ;;  %v28_v34 = vld [vmem:[%s894_s2 + $0x70] sm:$0xff]  ;;  %v54_v37 = vld [vmem:[%s894_s2 + $0x140] sm:$0xff]  ;;  %v291_v20 = vunpack.c.l.s4 %v685_v19 }
   0x9   :  { %598 = vmatprep.subr.bf16.mxu0 %v682_v0  ;;  %619 = vmatprep.subr.bf16.mxu1 %v682_v0  ;;  %v626_v35 = vpack.c.bf16 %v53_v32, %v52_v31  ;;  %v29_v36 = vld [vmem:[%s894_s2 + $0x78] sm:$0xff]  ;;  %v55_v38 = vld [vmem:[%s894_s2 + $0x148] sm:$0xff]  ;;  %v30_v39 = vld [vmem:[%s894_s2 + $0x80] sm:$0xff] }
   0xa   :  { %v31_v40 = vld [vmem:[%s894_s2 + $0x88] sm:$0xff]  ;;  %v614_v41 = vpack.c.bf16 %v29_v36, %v28_v34  ;;  %v629_v42 = vpack.c.bf16 %v55_v38, %v54_v37  ;;  %v32_v44 = vld [vmem:[%s894_s2 + $0x90] sm:$0xff]  ;;  %v33_v45 = vld [vmem:[%s894_s2 + $0x98] sm:$0xff]  ;;  %v292_v22 = vunpack.c.0.s8 %v291_v20  ;;  %v335_v36 = vand.u32 127, %v136_v18 }
   0xb   :  { %v640_v43 = vpack.c.bf16 %v31_v40, %v30_v39  ;;  %v64_v46 = vld [vmem:[%s895_s0] sm:$0x3]  ;;  %v644_v47 = vpack.c.bf16 %v33_v45, %v32_v44  ;;  %v35_v50 = vld [vmem:[%s894_s2 + $0xa8] sm:$0xff]  ;;  %v36_v52 = vld [vmem:[%s894_s2 + $0xb0] sm:$0xff] }
   0xc   :  { %600 = vmatpush3.bf16.msra.mxu0 %v599_v10  ;;  %621 = vmatpush3.bf16.msra.mxu1 %v620_v23  ;;  %v210_v48 = vld [vmem:[%s896_s1] sm:$0xff]  ;;  %v37_v53 = vld [vmem:[%s894_s2 + $0xb8] sm:$0xff]  ;;  %v39_v56 = vld [vmem:[%s894_s2 + $0xc8] sm:$0xff] }
   0xd   :  { %601 = vmatprep.subr.bf16.mxu0 %v682_v0  ;;  %622 = vmatprep.subr.bf16.mxu1 %v682_v0  ;;  %v34_v49 = vld [vmem:[%s894_s2 + $0xa0] sm:$0xff]  ;;  %v652_v54 = vpack.c.bf16 %v37_v53, %v36_v52  ;;  %v40_v58 = vld [vmem:[%s894_s2 + $0xd0] sm:$0xff]  ;;  %v41_v59 = vld [vmem:[%s894_s2 + $0xd8] sm:$0xff] }
   0xe   :  { %v648_v51 = vpack.c.bf16 %v35_v50, %v34_v49  ;;  %v38_v55 = vld [vmem:[%s894_s2 + $0xc0] sm:$0xff]  ;;  %v660_v60 = vpack.c.bf16 %v41_v59, %v40_v58  ;;  %v43_v62 = vld [vmem:[%s894_s2 + $0xe8] sm:$0xff]  ;;  %v44_v1 = vld [vmem:[%s894_s2 + $0xf0] sm:$0xff] }
   0xf   :  { %v656_v57 = vpack.c.bf16 %v39_v56, %v38_v55  ;;  %v42_v61 = vld [vmem:[%s894_s2 + $0xe0] sm:$0xff]  ;;  %v45_v2 = vld [vmem:[%s894_s2 + $0xf8] sm:$0xff]  ;;  %v211_v5 = vld [vmem:[%s896_s1 + $0x8] sm:$0xff] }
  0x10   :  { %603 = vmatpush3.bf16.msra.mxu0 %v602_v13  ;;  %624 = vmatpush3.bf16.msra.mxu1 %v623_v29  ;;  %v664_v63 = vpack.c.bf16 %v43_v62, %v42_v61  ;;  %v668_v3 = vpack.c.bf16 %v45_v2, %v44_v1  ;;  %v56_v6 = vld [vmem:[%s894_s2 + $0x150] sm:$0xff]  ;;  %v57_v7 = vld [vmem:[%s894_s2 + $0x158] sm:$0xff]  ;;  %v58_v9 = vld [vmem:[%s894_s2 + $0x160] sm:$0xff] }
  0x11   :  { %604 = vmatprep.subr.bf16.mxu0 %v682_v0  ;;  %625 = vmatprep.subr.bf16.mxu1 %v682_v0  ;;  %v632_v8 = vpack.c.bf16 %v57_v7, %v56_v6  ;;  %v59_v10 = vld [vmem:[%s894_s2 + $0x168] sm:$0xff]  ;;  %v60_v12 = vld [vmem:[%s894_s2 + $0x170] sm:$0xff]  ;;  %v61_v13 = vld [vmem:[%s894_s2 + $0x178] sm:$0xff] }
  0x12   :  { %v635_v11 = vpack.c.bf16 %v59_v10, %v58_v9  ;;  %v638_v14 = vpack.c.bf16 %v61_v13, %v60_v12 }
  0x14   :  { %606 = vmatpush3.bf16.msra.mxu0 %v605_v21  ;;  %627 = vmatpush3.bf16.msra.mxu1 %v626_v35  ;;  %v137_v21 = vshrl.u32 %v136_v18, 7  ;;  %v62_v35 = vld [vmem:[%s894_s2 + $0x180] sm:$0xff] }
  0x15   :  { %607 = vmatprep.subr.bf16.mxu0 %v682_v0  ;;  %628 = vmatprep.subr.bf16.mxu1 %v682_v0 }
  0x16   :  { %v295_v23 = vsub.s32 %v292_v22, %v137_v21  ;;  %v138_v28 = vsub.s32 0, %v137_v21  ;;  %v338_v38 = vsub.s32 %v335_v36, %v137_v21 }
  0x18   :  { %609 = vmatpush3.bf16.msra.mxu0 %v608_v27  ;;  %630 = vmatpush3.bf16.msra.mxu1 %v629_v42 }
  0x19   :  { %610 = vmatprep.subr.bf16.mxu0 %v682_v0  ;;  %631 = vmatprep.subr.bf16.mxu1 %v682_v0 }
  0x1c   :  { %612 = vmatpush3.bf16.msra.mxu0 %v611_v33  ;;  %633 = vmatpush3.bf16.msra.mxu1 %v632_v8 }
  0x1d   :  { %613 = vmatprep.subr.bf16.mxu0 %v682_v0  ;;  %634 = vmatprep.subr.bf16.mxu1 %v682_v0 }
  0x20   :  { %615 = vmatpush3.bf16.msra.mxu0 %v614_v41  ;;  %636 = vmatpush3.bf16.msra.mxu1 %v635_v11 }
  0x21   :  { %641 = vmatprep.subr.bf16.mxu0 %v640_v43  ;;  %637 = vmatprep.subr.bf16.mxu1 %v682_v0 }
  0x23   :  { %515 = vmatmul.mubr.f32.vlgmr.msra.gmra.mrb[0].mxu0 %v64_v46 }
  0x24   :  { %643 = vmatpush3.bf16.msra.mxu0 %v640_v43  ;;  %584 = vmatprep.mubr.f32.mxu0 %v210_v48  ;;  %v63_v43 = vld [vmem:[%s894_s2 + $0x188] sm:$0xff]  ;;  %v330_v48 = vsub.s32 1, %v137_v21 }
  0x25   :  { %645 = vmatprep.subr.bf16.mxu0 %v644_v47  ;;  %639 = vmatpush3.bf16.msra.mxu1 %v638_v14  ;;  %v139_v44 = vrot.slane %v63_v43, %v138_v28 }
  0x26   :  { %587 = vmatprep.subr.mxu1 %v684_v4  ;;  %v331_v49 = vrot.slane %v63_v43, %v330_v48 }
  0x28   :  { %647 = vmatpush3.bf16.msra.mxu0 %v644_v47 }
  0x29   :  { %649 = vmatprep.subr.bf16.mxu0 %v648_v51 }
  0x2c   :  { %651 = vmatpush3.bf16.msra.mxu0 %v648_v51 }
  0x2d   :  { %653 = vmatprep.subr.bf16.mxu0 %v652_v54 }
  0x30   :  { %655 = vmatpush3.bf16.msra.mxu0 %v652_v54 }
  0x31   :  { %657 = vmatprep.subr.bf16.mxu0 %v656_v57 }
  0x34   :  { %659 = vmatpush3.bf16.msra.mxu0 %v656_v57 }
  0x35   :  { %661 = vmatprep.subr.bf16.mxu0 %v660_v60 }
  0x38   :  { %663 = vmatpush3.bf16.msra.mxu0 %v660_v60 }
  0x39   :  { %665 = vmatprep.subr.bf16.mxu0 %v664_v63 }
  0x3c   :  { %667 = vmatpush3.bf16.msra.mxu0 %v664_v63 }
  0x3d   :  { %669 = vmatprep.subr.bf16.mxu0 %v668_v3 }
  0x40   :  { %671 = vmatpush3.bf16.msra.mxu0 %v668_v3 }
  0x43   :  { %585 = vmatmul.mubr.f32.vlgmr.msra.gmra.mrb[2].mxu0 %v211_v5 }
  0xf6   :  { %v131_v15 = vpop.f32.mrb[0].mxu0 }
  0xf7   :  { %676 = vtanh.f32 %v131_v15  ;;  %v516_v16 = vpop.f32.mrb[1].mxu0 }
 0x101   :  { %v677_v17 = vpop.eup %676 }
 0x102   :  { %550 = vmatmul.mubr.f32.vlgmr.msra.gmra.mrb[0].mxu1 %v677_v17  ;;  %v296_v24 = vrot.slane %v677_v17, %v295_v23 }
 0x103   :  { %589 = vmatprep.mubr.msk.f32.mxu1 %vm683_vm0, %v684_v4  ;;  %588 = vmatpush3.msra.mxu1 %v62_v35 }
 0x104   :  { %v297_v26 = vcombine.high %v296_v24, %v296_v24  ;;  %v304_v29 = vrot.slane %v296_v24, %v295_v23 }
 0x106   :  { %v311_v27 = vrot.slane %v297_v26, %v295_v23  ;;  %v315_v32 = vrot.slane %v304_v29, %v138_v28 }
 0x108   :  { %v319_v30 = vrot.slane %v311_v27, %v138_v28 }
 0x116   :  { %v586_v25 = vpop.f32.mrb[2].mxu0 }
 0x117   :  { %678 = vtanh.f32 %v586_v25  ;;  %v278_v0 = vpop.f32.mrb[3].mxu0 }
 0x118   :  { %680 = vtanh.f32 %v278_v0 }
 0x121   :  { %v679_v31 = vpop.eup %678 }
 0x122   :  { %v681_v33 = vpop.eup %680  ;;  %v323_v4 = vmul.f32 %v679_v31, %v319_v30 }
 0x123   :  { %v322_v34 = vmul.f32 %v681_v33, %v315_v32 }
 0x125   :  { %324 = vadd.xlane.f32.xlu0 %v322_v34 }
 0x129   :  { %326 = vadd.xlane.f32.xlu0 %v323_v4 }
 0x1b2   :  { %v325_v37 = vpop.xlane.xlu0 %324 }
 0x1b3   :  { %v339_v40 = vrot.slane %v325_v37, %v338_v38 }
 0x1b6   :  { %v327_v39 = vpop.xlane.xlu0 %326 }
 0x1b7   :  { %v343_v41 = vrot.slane %v327_v39, %v338_v38 }
 0x1b9   :  { %v345_v42 = vsel %vm344_vm1, %v343_v41, %v339_v40 }
 0x1ba   :  { %590 = vmatmul.mubr.msk.f32.vlgmr.msra.gmra.mrb[2].mxu1 %vm346_vm2, %v345_v42 }
 0x1d5   :  { %v206_v45 = vpop.f32.mrb[0].mxu1 }
 0x1d6   :  { %v207_v46 = vadd.f32 %v206_v45, %v139_v44  ;;  %v551_v47 = vpop.f32.mrb[1].mxu1 }
 0x1d8   :  { %419 = vst [vmem:[%s897_s3] sm:$0x3] %v207_v46 }
 0x28d   :  { %v415_v50 = vpop.f32.mrb[2].mxu1 }
 0x28e   :  { %v416_v51 = vadd.f32 %v415_v50, %v331_v49  ;;  %v591_v52 = vpop.f32.mrb[3].mxu1 }
 0x290   :  { %427 = vst [vmem:[%s897_s3 + $0x2] sm:$0x3] %v416_v51 }

</bundles_post_ra>
